<compile_context>
chip_gen: v7x
topology: tpu7x:2x2x1
jax: 0.10.0
libtpu: 0.0.40
codegen_flags: <defaults>
</compile_context>

<pallas_src>
import jax
import jax.numpy as jnp
import numpy as np
from jax.experimental import pallas as pl
from jax.experimental.pallas import tpu as pltpu


def calibrated_linear_kernel(
    x_ref,      # (F, Bt)      input feature block (batch on lanes)
    ckp_ref,    # (F, K-1)     per-feature interpolation keypoints
    cil_ref,    # (F, K-1)     per-feature 1 / interval-length
    ch_ref,     # (F, K-1)     per-feature segment heights (kernel[1:])
    cb_ref,     # (F, 1)       per-feature calibrator bias (kernel[0])
    lw_ref,     # (F, 1)       linear weights
    lb_ref,     # (1, 1)       linear bias (zeros when weighted_average)
    okp_ref,    # (1, OK-1)    output-calibrator interpolation keypoints
    oil_ref,    # (1, OK-1)    output-calibrator 1 / interval-length
    oh_ref,     # (1, OK-1)    output-calibrator segment heights
    ob_ref,     # (1, 1)       output-calibrator bias
    out_ref,    # (1, Bt)      output block (lane-dense)
):
    x = x_ref[...]                                   # (F, Bt)

    # --- per-feature piecewise-linear calibration (calibrate_and_stack) ---
    ckp = ckp_ref[...]                               # hoisted loads, indexed below
    cil = cil_ref[...]
    ch = ch_ref[...]
    cal = cb_ref[...] + jnp.zeros_like(x)            # (F, Bt)
    for j in range(ckp.shape[1]):                    # static unroll over keypoints
        w = jnp.clip((x - ckp[:, j:j + 1]) * cil[:, j:j + 1], 0.0, 1.0)
        cal = cal + w * ch[:, j:j + 1]

    # --- linear combination (sublane reduce over F; no MXU for tiny F) ---
    lin = jnp.sum(cal * lw_ref[...], axis=0, keepdims=True) + lb_ref[...]  # (1, Bt)

    # --- output calibrator (piecewise-linear on the scalar result) ---
    okp = okp_ref[...]
    oil = oil_ref[...]
    oh = oh_ref[...]
    out = ob_ref[...] + jnp.zeros_like(lin)          # (1, Bt)
    for j in range(okp.shape[1]):
        w = jnp.clip((lin - okp[:, j:j + 1]) * oil[:, j:j + 1], 0.0, 1.0)
        out = out + w * oh[:, j:j + 1]

    out_ref[...] = out                               # unmasked lane-dense store


def calibrated_linear(x, params, *, block_b=1024):
    """x: (B, F) float32. params: tuple of the 10 parameter arrays (keypoint-major,
    as in the reference). Returns (B, 1)."""
    ckp, clen, ch, cb, lw, lb, okp, olen, oh, ob = params
    B, F = x.shape
    dtype = x.dtype

    # Batch goes on the lane axis: tile must be a multiple of 128; pad the batch
    # (remainder handled by zero-padding, padded outputs are sliced away).
    lane_b = pl.cdiv(B, 128) * 128
    block_b = max(128, min(block_b, lane_b))
    b_pad = pl.cdiv(B, block_b) * block_b
    n_blocks = b_pad // block_b

    # Layout plumbing: feature/keypoint axes on sublanes, batch on lanes; fold the
    # divisions into precomputed reciprocals (parameter-side constant fold).
    x_t = jnp.zeros((F, b_pad), dtype).at[:, :B].set(x.T)
    ckp_t = jnp.asarray(ckp, dtype).T                # (F, K-1)
    cil_t = (1.0 / jnp.asarray(clen, dtype)).T       # (F, K-1)
    ch_t = jnp.asarray(ch, dtype).T                  # (F, K-1)
    cb_t = jnp.asarray(cb, dtype).T                  # (F, 1)
    lw_t = jnp.asarray(lw, dtype).T                  # (F, 1)
    lb_t = jnp.asarray(lb, dtype)                    # (1, 1)
    okp_t = jnp.asarray(okp, dtype).T                # (1, OK-1)
    oil_t = (1.0 / jnp.asarray(olen, dtype)).T       # (1, OK-1)
    oh_t = jnp.asarray(oh, dtype).T                  # (1, OK-1)
    ob_t = jnp.asarray(ob, dtype)                    # (1, 1)

    def full_spec(a):
        nd = a.ndim
        return pl.BlockSpec(a.shape, lambda i, _nd=nd: (0,) * _nd)

    in_specs = [
        pl.BlockSpec((F, block_b), lambda i: (0, i)),   # x: tiled over batch lanes
        full_spec(ckp_t), full_spec(cil_t), full_spec(ch_t), full_spec(cb_t),
        full_spec(lw_t), full_spec(lb_t),
        full_spec(okp_t), full_spec(oil_t), full_spec(oh_t), full_spec(ob_t),
    ]
    out_spec = pl.BlockSpec((1, block_b), lambda i: (0, i))

    out_t = pl.pallas_call(
        calibrated_linear_kernel,
        out_shape=jax.ShapeDtypeStruct((1, b_pad), dtype),
        grid=(n_blocks,),
        in_specs=in_specs,
        out_specs=out_spec,
        compiler_params=pltpu.CompilerParams(dimension_semantics=("parallel",)),
    )(x_t, ckp_t, cil_t, ch_t, cb_t, lw_t, lb_t, okp_t, oil_t, oh_t, ob_t)

    return out_t[:, :B].T                            # (B, 1)


def reference(x, params):
    """Plain-numpy replica of the PyTorch forward for verification."""
    ckp, clen, ch, cb, lw, lb, okp, olen, oh, ob = [np.asarray(p) for p in params]
    x = np.asarray(x)
    w = np.clip((x[:, None, :] - ckp[None]) / clen[None], 0.0, 1.0)   # (B, K-1, F)
    cal = cb + np.sum(w * ch[None], axis=1)                            # (B, F)
    lin = cal @ lw.T + lb                                              # (B, 1)
    ow = np.clip((lin - okp.T) / olen.T, 0.0, 1.0)                     # (B, OK-1)
    return ob + np.sum(ow * oh.T, axis=1, keepdims=True)               # (B, 1)


if __name__ == "__main__":
    B, F = 16, 4           # batch, num_features (all numerical)
    K = 10                 # keypoints per feature calibrator
    OK = 8                 # output_calibration_num_keypoints

    key = jax.random.PRNGKey(0)
    k_x, k_ch, k_cb, k_lw, k_oh, k_ob = jax.random.split(key, 6)

    # Inputs span beyond the keypoint range so both clips are exercised.
    x = jax.random.uniform(k_x, (B, F), jnp.float32, minval=-1.5, maxval=1.5)

    # Feature calibrators: keypoints (K,) per feature, slightly shifted per feature.
    base_kp = np.linspace(-1.0, 1.0, K, dtype=np.float32)               # (K,)
    feat_kp = base_kp[:, None] + 0.05 * np.arange(F, dtype=np.float32)  # (K, F)
    ckp = jnp.asarray(feat_kp[:-1])                                     # (K-1, F)
    clen = jnp.asarray(feat_kp[1:] - feat_kp[:-1])                      # (K-1, F)
    ch = 0.2 * jax.random.normal(k_ch, (K - 1, F), jnp.float32)         # kernel[1:]
    cb = 0.1 * jax.random.normal(k_cb, (1, F), jnp.float32)             # kernel[0]

    # Linear layer: output calibration configured => weighted_average => no bias.
    lw = jnp.full((1, F), 1.0 / F, jnp.float32) + 0.05 * jax.random.normal(
        k_lw, (1, F), jnp.float32
    )
    lb = jnp.zeros((1, 1), jnp.float32)

    # Output calibrator over the expected range of the linear output.
    out_kp = np.linspace(-2.0, 2.0, OK, dtype=np.float32)
    okp = jnp.asarray(out_kp[:-1])[:, None]                             # (OK-1, 1)
    olen = jnp.asarray(out_kp[1:] - out_kp[:-1])[:, None]               # (OK-1, 1)
    oh = 0.3 * jax.random.normal(k_oh, (OK - 1, 1), jnp.float32)
    ob = 0.1 * jax.random.normal(k_ob, (1, 1), jnp.float32)

    params = (ckp, clen, ch, cb, lw, lb, okp, olen, oh, ob)

    out = calibrated_linear(x, params)
    out = jax.block_until_ready(out)

    ref = reference(x, params)
    np.testing.assert_allclose(np.asarray(out), ref, rtol=1e-5, atol=1e-5)
    assert out.shape == (B, 1)

    print("KERNEL_OK")
</pallas_src>

<mosaic_0001>
module attributes {stable_mosaic.version = 11 : i64} {
  func.func @calibrated_linear_kernel(%arg0: i32, %arg1: memref<4x128xf32, #tpu.memory_space<vmem>>, %arg2: memref<4x9xf32, #tpu.memory_space<vmem>>, %arg3: memref<4x9xf32, #tpu.memory_space<vmem>>, %arg4: memref<4x9xf32, #tpu.memory_space<vmem>>, %arg5: memref<4x1xf32, #tpu.memory_space<vmem>>, %arg6: memref<4x1xf32, #tpu.memory_space<vmem>>, %arg7: memref<1x1xf32, #tpu.memory_space<vmem>>, %arg8: memref<1x7xf32, #tpu.memory_space<vmem>>, %arg9: memref<1x7xf32, #tpu.memory_space<vmem>>, %arg10: memref<1x7xf32, #tpu.memory_space<vmem>>, %arg11: memref<1x1xf32, #tpu.memory_space<vmem>>, %arg12: memref<1x128xf32, #tpu.memory_space<vmem>>) attributes {dimension_semantics = [#tpu.dimension_semantics<parallel>], iteration_bounds = array<i64: 1>, scalar_prefetch = 0 : i64, scratch_operands = 0 : i64, tpu.core_type = #tpu.core_type<tc>, window_params = [{transform_indices = @transform_0, window_bounds = array<i64: 4, 128>}, {pipeline_mode = #tpu.pipeline_mode<synchronous>, transform_indices = @transform_1, window_bounds = array<i64: 4, 9>}, {pipeline_mode = #tpu.pipeline_mode<synchronous>, transform_indices = @transform_2, window_bounds = array<i64: 4, 9>}, {pipeline_mode = #tpu.pipeline_mode<synchronous>, transform_indices = @transform_3, window_bounds = array<i64: 4, 9>}, {pipeline_mode = #tpu.pipeline_mode<synchronous>, transform_indices = @transform_4, window_bounds = array<i64: 4, 1>}, {pipeline_mode = #tpu.pipeline_mode<synchronous>, transform_indices = @transform_5, window_bounds = array<i64: 4, 1>}, {pipeline_mode = #tpu.pipeline_mode<synchronous>, transform_indices = @transform_6, window_bounds = array<i64: 1, 1>}, {pipeline_mode = #tpu.pipeline_mode<synchronous>, transform_indices = @transform_7, window_bounds = array<i64: 1, 7>}, {pipeline_mode = #tpu.pipeline_mode<synchronous>, transform_indices = @transform_8, window_bounds = array<i64: 1, 7>}, {pipeline_mode = #tpu.pipeline_mode<synchronous>, transform_indices = @transform_9, window_bounds = array<i64: 1, 7>}, {pipeline_mode = #tpu.pipeline_mode<synchronous>, transform_indices = @transform_10, window_bounds = array<i64: 1, 1>}, {transform_indices = @transform_11, window_bounds = array<i64: 1, 128>}]} {
    %c0 = arith.constant 0 : index
    %c0_0 = arith.constant 0 : index
    %0 = vector.load %arg1[%c0, %c0_0] : memref<4x128xf32, #tpu.memory_space<vmem>>, vector<4x128xf32>
    %c0_1 = arith.constant 0 : index
    %c0_2 = arith.constant 0 : index
    %1 = vector.load %arg2[%c0_1, %c0_2] : memref<4x9xf32, #tpu.memory_space<vmem>>, vector<4x9xf32>
    %c0_3 = arith.constant 0 : index
    %c0_4 = arith.constant 0 : index
    %2 = vector.load %arg3[%c0_3, %c0_4] : memref<4x9xf32, #tpu.memory_space<vmem>>, vector<4x9xf32>
    %c0_5 = arith.constant 0 : index
    %c0_6 = arith.constant 0 : index
    %3 = vector.load %arg4[%c0_5, %c0_6] : memref<4x9xf32, #tpu.memory_space<vmem>>, vector<4x9xf32>
    %c0_7 = arith.constant 0 : index
    %c0_8 = arith.constant 0 : index
    %4 = vector.load %arg5[%c0_7, %c0_8] : memref<4x1xf32, #tpu.memory_space<vmem>>, vector<4x1xf32>
    %cst = arith.constant 0.000000e+00 : f32
    %5 = vector.broadcast %cst : f32 to vector<4x128xf32>
    %6 = vector.broadcast %4 : vector<4x1xf32> to vector<4x128xf32>
    %7 = arith.addf %6, %5 : vector<4x128xf32>
    %8 = vector.extract_strided_slice %1 {offsets = [0, 0], sizes = [4, 1], strides = [1, 1]} : vector<4x9xf32> to vector<4x1xf32>
    %9 = vector.broadcast %8 : vector<4x1xf32> to vector<4x128xf32>
    %10 = arith.subf %0, %9 : vector<4x128xf32>
    %11 = vector.extract_strided_slice %2 {offsets = [0, 0], sizes = [4, 1], strides = [1, 1]} : vector<4x9xf32> to vector<4x1xf32>
    %12 = vector.broadcast %11 : vector<4x1xf32> to vector<4x128xf32>
    %13 = arith.mulf %10, %12 : vector<4x128xf32>
    %cst_9 = arith.constant 0.000000e+00 : f32
    %cst_10 = arith.constant 1.000000e+00 : f32
    %14 = vector.broadcast %cst_9 : f32 to vector<4x128xf32>
    %15 = arith.maximumf %14, %13 : vector<4x128xf32>
    %16 = vector.broadcast %cst_10 : f32 to vector<4x128xf32>
    %17 = arith.minimumf %16, %15 : vector<4x128xf32>
    %18 = vector.extract_strided_slice %3 {offsets = [0, 0], sizes = [4, 1], strides = [1, 1]} : vector<4x9xf32> to vector<4x1xf32>
    %19 = vector.broadcast %18 : vector<4x1xf32> to vector<4x128xf32>
    %20 = arith.mulf %17, %19 : vector<4x128xf32>
    %21 = arith.addf %7, %20 : vector<4x128xf32>
    %22 = vector.extract_strided_slice %1 {offsets = [0, 1], sizes = [4, 1], strides = [1, 1]} : vector<4x9xf32> to vector<4x1xf32>
    %23 = vector.broadcast %22 : vector<4x1xf32> to vector<4x128xf32>
    %24 = arith.subf %0, %23 : vector<4x128xf32>
    %25 = vector.extract_strided_slice %2 {offsets = [0, 1], sizes = [4, 1], strides = [1, 1]} : vector<4x9xf32> to vector<4x1xf32>
    %26 = vector.broadcast %25 : vector<4x1xf32> to vector<4x128xf32>
    %27 = arith.mulf %24, %26 : vector<4x128xf32>
    %cst_11 = arith.constant 0.000000e+00 : f32
    %cst_12 = arith.constant 1.000000e+00 : f32
    %28 = vector.broadcast %cst_11 : f32 to vector<4x128xf32>
    %29 = arith.maximumf %28, %27 : vector<4x128xf32>
    %30 = vector.broadcast %cst_12 : f32 to vector<4x128xf32>
    %31 = arith.minimumf %30, %29 : vector<4x128xf32>
    %32 = vector.extract_strided_slice %3 {offsets = [0, 1], sizes = [4, 1], strides = [1, 1]} : vector<4x9xf32> to vector<4x1xf32>
    %33 = vector.broadcast %32 : vector<4x1xf32> to vector<4x128xf32>
    %34 = arith.mulf %31, %33 : vector<4x128xf32>
    %35 = arith.addf %21, %34 : vector<4x128xf32>
    %36 = vector.extract_strided_slice %1 {offsets = [0, 2], sizes = [4, 1], strides = [1, 1]} : vector<4x9xf32> to vector<4x1xf32>
    %37 = vector.broadcast %36 : vector<4x1xf32> to vector<4x128xf32>
    %38 = arith.subf %0, %37 : vector<4x128xf32>
    %39 = vector.extract_strided_slice %2 {offsets = [0, 2], sizes = [4, 1], strides = [1, 1]} : vector<4x9xf32> to vector<4x1xf32>
    %40 = vector.broadcast %39 : vector<4x1xf32> to vector<4x128xf32>
    %41 = arith.mulf %38, %40 : vector<4x128xf32>
    %cst_13 = arith.constant 0.000000e+00 : f32
    %cst_14 = arith.constant 1.000000e+00 : f32
    %42 = vector.broadcast %cst_13 : f32 to vector<4x128xf32>
    %43 = arith.maximumf %42, %41 : vector<4x128xf32>
    %44 = vector.broadcast %cst_14 : f32 to vector<4x128xf32>
    %45 = arith.minimumf %44, %43 : vector<4x128xf32>
    %46 = vector.extract_strided_slice %3 {offsets = [0, 2], sizes = [4, 1], strides = [1, 1]} : vector<4x9xf32> to vector<4x1xf32>
    %47 = vector.broadcast %46 : vector<4x1xf32> to vector<4x128xf32>
    %48 = arith.mulf %45, %47 : vector<4x128xf32>
    %49 = arith.addf %35, %48 : vector<4x128xf32>
    %50 = vector.extract_strided_slice %1 {offsets = [0, 3], sizes = [4, 1], strides = [1, 1]} : vector<4x9xf32> to vector<4x1xf32>
    %51 = vector.broadcast %50 : vector<4x1xf32> to vector<4x128xf32>
    %52 = arith.subf %0, %51 : vector<4x128xf32>
    %53 = vector.extract_strided_slice %2 {offsets = [0, 3], sizes = [4, 1], strides = [1, 1]} : vector<4x9xf32> to vector<4x1xf32>
    %54 = vector.broadcast %53 : vector<4x1xf32> to vector<4x128xf32>
    %55 = arith.mulf %52, %54 : vector<4x128xf32>
    %cst_15 = arith.constant 0.000000e+00 : f32
    %cst_16 = arith.constant 1.000000e+00 : f32
    %56 = vector.broadcast %cst_15 : f32 to vector<4x128xf32>
    %57 = arith.maximumf %56, %55 : vector<4x128xf32>
    %58 = vector.broadcast %cst_16 : f32 to vector<4x128xf32>
    %59 = arith.minimumf %58, %57 : vector<4x128xf32>
    %60 = vector.extract_strided_slice %3 {offsets = [0, 3], sizes = [4, 1], strides = [1, 1]} : vector<4x9xf32> to vector<4x1xf32>
    %61 = vector.broadcast %60 : vector<4x1xf32> to vector<4x128xf32>
    %62 = arith.mulf %59, %61 : vector<4x128xf32>
    %63 = arith.addf %49, %62 : vector<4x128xf32>
    %64 = vector.extract_strided_slice %1 {offsets = [0, 4], sizes = [4, 1], strides = [1, 1]} : vector<4x9xf32> to vector<4x1xf32>
    %65 = vector.broadcast %64 : vector<4x1xf32> to vector<4x128xf32>
    %66 = arith.subf %0, %65 : vector<4x128xf32>
    %67 = vector.extract_strided_slice %2 {offsets = [0, 4], sizes = [4, 1], strides = [1, 1]} : vector<4x9xf32> to vector<4x1xf32>
    %68 = vector.broadcast %67 : vector<4x1xf32> to vector<4x128xf32>
    %69 = arith.mulf %66, %68 : vector<4x128xf32>
    %cst_17 = arith.constant 0.000000e+00 : f32
    %cst_18 = arith.constant 1.000000e+00 : f32
    %70 = vector.broadcast %cst_17 : f32 to vector<4x128xf32>
    %71 = arith.maximumf %70, %69 : vector<4x128xf32>
    %72 = vector.broadcast %cst_18 : f32 to vector<4x128xf32>
    %73 = arith.minimumf %72, %71 : vector<4x128xf32>
    %74 = vector.extract_strided_slice %3 {offsets = [0, 4], sizes = [4, 1], strides = [1, 1]} : vector<4x9xf32> to vector<4x1xf32>
    %75 = vector.broadcast %74 : vector<4x1xf32> to vector<4x128xf32>
    %76 = arith.mulf %73, %75 : vector<4x128xf32>
    %77 = arith.addf %63, %76 : vector<4x128xf32>
    %78 = vector.extract_strided_slice %1 {offsets = [0, 5], sizes = [4, 1], strides = [1, 1]} : vector<4x9xf32> to vector<4x1xf32>
    %79 = vector.broadcast %78 : vector<4x1xf32> to vector<4x128xf32>
    %80 = arith.subf %0, %79 : vector<4x128xf32>
    %81 = vector.extract_strided_slice %2 {offsets = [0, 5], sizes = [4, 1], strides = [1, 1]} : vector<4x9xf32> to vector<4x1xf32>
    %82 = vector.broadcast %81 : vector<4x1xf32> to vector<4x128xf32>
    %83 = arith.mulf %80, %82 : vector<4x128xf32>
    %cst_19 = arith.constant 0.000000e+00 : f32
    %cst_20 = arith.constant 1.000000e+00 : f32
    %84 = vector.broadcast %cst_19 : f32 to vector<4x128xf32>
    %85 = arith.maximumf %84, %83 : vector<4x128xf32>
    %86 = vector.broadcast %cst_20 : f32 to vector<4x128xf32>
    %87 = arith.minimumf %86, %85 : vector<4x128xf32>
    %88 = vector.extract_strided_slice %3 {offsets = [0, 5], sizes = [4, 1], strides = [1, 1]} : vector<4x9xf32> to vector<4x1xf32>
    %89 = vector.broadcast %88 : vector<4x1xf32> to vector<4x128xf32>
    %90 = arith.mulf %87, %89 : vector<4x128xf32>
    %91 = arith.addf %77, %90 : vector<4x128xf32>
    %92 = vector.extract_strided_slice %1 {offsets = [0, 6], sizes = [4, 1], strides = [1, 1]} : vector<4x9xf32> to vector<4x1xf32>
    %93 = vector.broadcast %92 : vector<4x1xf32> to vector<4x128xf32>
    %94 = arith.subf %0, %93 : vector<4x128xf32>
    %95 = vector.extract_strided_slice %2 {offsets = [0, 6], sizes = [4, 1], strides = [1, 1]} : vector<4x9xf32> to vector<4x1xf32>
    %96 = vector.broadcast %95 : vector<4x1xf32> to vector<4x128xf32>
    %97 = arith.mulf %94, %96 : vector<4x128xf32>
    %cst_21 = arith.constant 0.000000e+00 : f32
    %cst_22 = arith.constant 1.000000e+00 : f32
    %98 = vector.broadcast %cst_21 : f32 to vector<4x128xf32>
    %99 = arith.maximumf %98, %97 : vector<4x128xf32>
    %100 = vector.broadcast %cst_22 : f32 to vector<4x128xf32>
    %101 = arith.minimumf %100, %99 : vector<4x128xf32>
    %102 = vector.extract_strided_slice %3 {offsets = [0, 6], sizes = [4, 1], strides = [1, 1]} : vector<4x9xf32> to vector<4x1xf32>
    %103 = vector.broadcast %102 : vector<4x1xf32> to vector<4x128xf32>
    %104 = arith.mulf %101, %103 : vector<4x128xf32>
    %105 = arith.addf %91, %104 : vector<4x128xf32>
    %106 = vector.extract_strided_slice %1 {offsets = [0, 7], sizes = [4, 1], strides = [1, 1]} : vector<4x9xf32> to vector<4x1xf32>
    %107 = vector.broadcast %106 : vector<4x1xf32> to vector<4x128xf32>
    %108 = arith.subf %0, %107 : vector<4x128xf32>
    %109 = vector.extract_strided_slice %2 {offsets = [0, 7], sizes = [4, 1], strides = [1, 1]} : vector<4x9xf32> to vector<4x1xf32>
    %110 = vector.broadcast %109 : vector<4x1xf32> to vector<4x128xf32>
    %111 = arith.mulf %108, %110 : vector<4x128xf32>
    %cst_23 = arith.constant 0.000000e+00 : f32
    %cst_24 = arith.constant 1.000000e+00 : f32
    %112 = vector.broadcast %cst_23 : f32 to vector<4x128xf32>
    %113 = arith.maximumf %112, %111 : vector<4x128xf32>
    %114 = vector.broadcast %cst_24 : f32 to vector<4x128xf32>
    %115 = arith.minimumf %114, %113 : vector<4x128xf32>
    %116 = vector.extract_strided_slice %3 {offsets = [0, 7], sizes = [4, 1], strides = [1, 1]} : vector<4x9xf32> to vector<4x1xf32>
    %117 = vector.broadcast %116 : vector<4x1xf32> to vector<4x128xf32>
    %118 = arith.mulf %115, %117 : vector<4x128xf32>
    %119 = arith.addf %105, %118 : vector<4x128xf32>
    %120 = vector.extract_strided_slice %1 {offsets = [0, 8], sizes = [4, 1], strides = [1, 1]} : vector<4x9xf32> to vector<4x1xf32>
    %121 = vector.broadcast %120 : vector<4x1xf32> to vector<4x128xf32>
    %122 = arith.subf %0, %121 : vector<4x128xf32>
    %123 = vector.extract_strided_slice %2 {offsets = [0, 8], sizes = [4, 1], strides = [1, 1]} : vector<4x9xf32> to vector<4x1xf32>
    %124 = vector.broadcast %123 : vector<4x1xf32> to vector<4x128xf32>
    %125 = arith.mulf %122, %124 : vector<4x128xf32>
    %cst_25 = arith.constant 0.000000e+00 : f32
    %cst_26 = arith.constant 1.000000e+00 : f32
    %126 = vector.broadcast %cst_25 : f32 to vector<4x128xf32>
    %127 = arith.maximumf %126, %125 : vector<4x128xf32>
    %128 = vector.broadcast %cst_26 : f32 to vector<4x128xf32>
    %129 = arith.minimumf %128, %127 : vector<4x128xf32>
    %130 = vector.extract_strided_slice %3 {offsets = [0, 8], sizes = [4, 1], strides = [1, 1]} : vector<4x9xf32> to vector<4x1xf32>
    %131 = vector.broadcast %130 : vector<4x1xf32> to vector<4x128xf32>
    %132 = arith.mulf %129, %131 : vector<4x128xf32>
    %133 = arith.addf %119, %132 : vector<4x128xf32>
    %c0_27 = arith.constant 0 : index
    %c0_28 = arith.constant 0 : index
    %134 = vector.load %arg6[%c0_27, %c0_28] : memref<4x1xf32, #tpu.memory_space<vmem>>, vector<4x1xf32>
    %135 = vector.broadcast %134 : vector<4x1xf32> to vector<4x128xf32>
    %136 = arith.mulf %133, %135 : vector<4x128xf32>
    %cst_29 = arith.constant dense<0.000000e+00> : vector<128xf32>
    %137 = vector.multi_reduction <add>, %136, %cst_29 [0] : vector<4x128xf32> to vector<128xf32>
    %138 = vector.shape_cast %137 : vector<128xf32> to vector<1x128xf32>
    %c0_30 = arith.constant 0 : index
    %c0_31 = arith.constant 0 : index
    %139 = vector.load %arg7[%c0_30, %c0_31] : memref<1x1xf32, #tpu.memory_space<vmem>>, vector<1x1xf32>
    %140 = vector.broadcast %139 : vector<1x1xf32> to vector<1x128xf32>
    %141 = arith.addf %138, %140 : vector<1x128xf32>
    %c0_32 = arith.constant 0 : index
    %c0_33 = arith.constant 0 : index
    %142 = vector.load %arg8[%c0_32, %c0_33] : memref<1x7xf32, #tpu.memory_space<vmem>>, vector<1x7xf32>
    %c0_34 = arith.constant 0 : index
    %c0_35 = arith.constant 0 : index
    %143 = vector.load %arg9[%c0_34, %c0_35] : memref<1x7xf32, #tpu.memory_space<vmem>>, vector<1x7xf32>
    %c0_36 = arith.constant 0 : index
    %c0_37 = arith.constant 0 : index
    %144 = vector.load %arg10[%c0_36, %c0_37] : memref<1x7xf32, #tpu.memory_space<vmem>>, vector<1x7xf32>
    %c0_38 = arith.constant 0 : index
    %c0_39 = arith.constant 0 : index
    %145 = vector.load %arg11[%c0_38, %c0_39] : memref<1x1xf32, #tpu.memory_space<vmem>>, vector<1x1xf32>
    %cst_40 = arith.constant 0.000000e+00 : f32
    %146 = vector.broadcast %cst_40 : f32 to vector<1x128xf32>
    %147 = vector.broadcast %145 : vector<1x1xf32> to vector<1x128xf32>
    %148 = arith.addf %147, %146 : vector<1x128xf32>
    %149 = vector.extract_strided_slice %142 {offsets = [0, 0], sizes = [1, 1], strides = [1, 1]} : vector<1x7xf32> to vector<1x1xf32>
    %150 = vector.broadcast %149 : vector<1x1xf32> to vector<1x128xf32>
    %151 = arith.subf %141, %150 : vector<1x128xf32>
    %152 = vector.extract_strided_slice %143 {offsets = [0, 0], sizes = [1, 1], strides = [1, 1]} : vector<1x7xf32> to vector<1x1xf32>
    %153 = vector.broadcast %152 : vector<1x1xf32> to vector<1x128xf32>
    %154 = arith.mulf %151, %153 : vector<1x128xf32>
    %cst_41 = arith.constant 0.000000e+00 : f32
    %cst_42 = arith.constant 1.000000e+00 : f32
    %155 = vector.broadcast %cst_41 : f32 to vector<1x128xf32>
    %156 = arith.maximumf %155, %154 : vector<1x128xf32>
    %157 = vector.broadcast %cst_42 : f32 to vector<1x128xf32>
    %158 = arith.minimumf %157, %156 : vector<1x128xf32>
    %159 = vector.extract_strided_slice %144 {offsets = [0, 0], sizes = [1, 1], strides = [1, 1]} : vector<1x7xf32> to vector<1x1xf32>
    %160 = vector.broadcast %159 : vector<1x1xf32> to vector<1x128xf32>
    %161 = arith.mulf %158, %160 : vector<1x128xf32>
    %162 = arith.addf %148, %161 : vector<1x128xf32>
    %163 = vector.extract_strided_slice %142 {offsets = [0, 1], sizes = [1, 1], strides = [1, 1]} : vector<1x7xf32> to vector<1x1xf32>
    %164 = vector.broadcast %163 : vector<1x1xf32> to vector<1x128xf32>
    %165 = arith.subf %141, %164 : vector<1x128xf32>
    %166 = vector.extract_strided_slice %143 {offsets = [0, 1], sizes = [1, 1], strides = [1, 1]} : vector<1x7xf32> to vector<1x1xf32>
    %167 = vector.broadcast %166 : vector<1x1xf32> to vector<1x128xf32>
    %168 = arith.mulf %165, %167 : vector<1x128xf32>
    %cst_43 = arith.constant 0.000000e+00 : f32
    %cst_44 = arith.constant 1.000000e+00 : f32
    %169 = vector.broadcast %cst_43 : f32 to vector<1x128xf32>
    %170 = arith.maximumf %169, %168 : vector<1x128xf32>
    %171 = vector.broadcast %cst_44 : f32 to vector<1x128xf32>
    %172 = arith.minimumf %171, %170 : vector<1x128xf32>
    %173 = vector.extract_strided_slice %144 {offsets = [0, 1], sizes = [1, 1], strides = [1, 1]} : vector<1x7xf32> to vector<1x1xf32>
    %174 = vector.broadcast %173 : vector<1x1xf32> to vector<1x128xf32>
    %175 = arith.mulf %172, %174 : vector<1x128xf32>
    %176 = arith.addf %162, %175 : vector<1x128xf32>
    %177 = vector.extract_strided_slice %142 {offsets = [0, 2], sizes = [1, 1], strides = [1, 1]} : vector<1x7xf32> to vector<1x1xf32>
    %178 = vector.broadcast %177 : vector<1x1xf32> to vector<1x128xf32>
    %179 = arith.subf %141, %178 : vector<1x128xf32>
    %180 = vector.extract_strided_slice %143 {offsets = [0, 2], sizes = [1, 1], strides = [1, 1]} : vector<1x7xf32> to vector<1x1xf32>
    %181 = vector.broadcast %180 : vector<1x1xf32> to vector<1x128xf32>
    %182 = arith.mulf %179, %181 : vector<1x128xf32>
    %cst_45 = arith.constant 0.000000e+00 : f32
    %cst_46 = arith.constant 1.000000e+00 : f32
    %183 = vector.broadcast %cst_45 : f32 to vector<1x128xf32>
    %184 = arith.maximumf %183, %182 : vector<1x128xf32>
    %185 = vector.broadcast %cst_46 : f32 to vector<1x128xf32>
    %186 = arith.minimumf %185, %184 : vector<1x128xf32>
    %187 = vector.extract_strided_slice %144 {offsets = [0, 2], sizes = [1, 1], strides = [1, 1]} : vector<1x7xf32> to vector<1x1xf32>
    %188 = vector.broadcast %187 : vector<1x1xf32> to vector<1x128xf32>
    %189 = arith.mulf %186, %188 : vector<1x128xf32>
    %190 = arith.addf %176, %189 : vector<1x128xf32>
    %191 = vector.extract_strided_slice %142 {offsets = [0, 3], sizes = [1, 1], strides = [1, 1]} : vector<1x7xf32> to vector<1x1xf32>
    %192 = vector.broadcast %191 : vector<1x1xf32> to vector<1x128xf32>
    %193 = arith.subf %141, %192 : vector<1x128xf32>
    %194 = vector.extract_strided_slice %143 {offsets = [0, 3], sizes = [1, 1], strides = [1, 1]} : vector<1x7xf32> to vector<1x1xf32>
    %195 = vector.broadcast %194 : vector<1x1xf32> to vector<1x128xf32>
    %196 = arith.mulf %193, %195 : vector<1x128xf32>
    %cst_47 = arith.constant 0.000000e+00 : f32
    %cst_48 = arith.constant 1.000000e+00 : f32
    %197 = vector.broadcast %cst_47 : f32 to vector<1x128xf32>
    %198 = arith.maximumf %197, %196 : vector<1x128xf32>
    %199 = vector.broadcast %cst_48 : f32 to vector<1x128xf32>
    %200 = arith.minimumf %199, %198 : vector<1x128xf32>
    %201 = vector.extract_strided_slice %144 {offsets = [0, 3], sizes = [1, 1], strides = [1, 1]} : vector<1x7xf32> to vector<1x1xf32>
    %202 = vector.broadcast %201 : vector<1x1xf32> to vector<1x128xf32>
    %203 = arith.mulf %200, %202 : vector<1x128xf32>
    %204 = arith.addf %190, %203 : vector<1x128xf32>
    %205 = vector.extract_strided_slice %142 {offsets = [0, 4], sizes = [1, 1], strides = [1, 1]} : vector<1x7xf32> to vector<1x1xf32>
    %206 = vector.broadcast %205 : vector<1x1xf32> to vector<1x128xf32>
    %207 = arith.subf %141, %206 : vector<1x128xf32>
    %208 = vector.extract_strided_slice %143 {offsets = [0, 4], sizes = [1, 1], strides = [1, 1]} : vector<1x7xf32> to vector<1x1xf32>
    %209 = vector.broadcast %208 : vector<1x1xf32> to vector<1x128xf32>
    %210 = arith.mulf %207, %209 : vector<1x128xf32>
    %cst_49 = arith.constant 0.000000e+00 : f32
    %cst_50 = arith.constant 1.000000e+00 : f32
    %211 = vector.broadcast %cst_49 : f32 to vector<1x128xf32>
    %212 = arith.maximumf %211, %210 : vector<1x128xf32>
    %213 = vector.broadcast %cst_50 : f32 to vector<1x128xf32>
    %214 = arith.minimumf %213, %212 : vector<1x128xf32>
    %215 = vector.extract_strided_slice %144 {offsets = [0, 4], sizes = [1, 1], strides = [1, 1]} : vector<1x7xf32> to vector<1x1xf32>
    %216 = vector.broadcast %215 : vector<1x1xf32> to vector<1x128xf32>
    %217 = arith.mulf %214, %216 : vector<1x128xf32>
    %218 = arith.addf %204, %217 : vector<1x128xf32>
    %219 = vector.extract_strided_slice %142 {offsets = [0, 5], sizes = [1, 1], strides = [1, 1]} : vector<1x7xf32> to vector<1x1xf32>
    %220 = vector.broadcast %219 : vector<1x1xf32> to vector<1x128xf32>
    %221 = arith.subf %141, %220 : vector<1x128xf32>
    %222 = vector.extract_strided_slice %143 {offsets = [0, 5], sizes = [1, 1], strides = [1, 1]} : vector<1x7xf32> to vector<1x1xf32>
    %223 = vector.broadcast %222 : vector<1x1xf32> to vector<1x128xf32>
    %224 = arith.mulf %221, %223 : vector<1x128xf32>
    %cst_51 = arith.constant 0.000000e+00 : f32
    %cst_52 = arith.constant 1.000000e+00 : f32
    %225 = vector.broadcast %cst_51 : f32 to vector<1x128xf32>
    %226 = arith.maximumf %225, %224 : vector<1x128xf32>
    %227 = vector.broadcast %cst_52 : f32 to vector<1x128xf32>
    %228 = arith.minimumf %227, %226 : vector<1x128xf32>
    %229 = vector.extract_strided_slice %144 {offsets = [0, 5], sizes = [1, 1], strides = [1, 1]} : vector<1x7xf32> to vector<1x1xf32>
    %230 = vector.broadcast %229 : vector<1x1xf32> to vector<1x128xf32>
    %231 = arith.mulf %228, %230 : vector<1x128xf32>
    %232 = arith.addf %218, %231 : vector<1x128xf32>
    %233 = vector.extract_strided_slice %142 {offsets = [0, 6], sizes = [1, 1], strides = [1, 1]} : vector<1x7xf32> to vector<1x1xf32>
    %234 = vector.broadcast %233 : vector<1x1xf32> to vector<1x128xf32>
    %235 = arith.subf %141, %234 : vector<1x128xf32>
    %236 = vector.extract_strided_slice %143 {offsets = [0, 6], sizes = [1, 1], strides = [1, 1]} : vector<1x7xf32> to vector<1x1xf32>
    %237 = vector.broadcast %236 : vector<1x1xf32> to vector<1x128xf32>
    %238 = arith.mulf %235, %237 : vector<1x128xf32>
    %cst_53 = arith.constant 0.000000e+00 : f32
    %cst_54 = arith.constant 1.000000e+00 : f32
    %239 = vector.broadcast %cst_53 : f32 to vector<1x128xf32>
    %240 = arith.maximumf %239, %238 : vector<1x128xf32>
    %241 = vector.broadcast %cst_54 : f32 to vector<1x128xf32>
    %242 = arith.minimumf %241, %240 : vector<1x128xf32>
    %243 = vector.extract_strided_slice %144 {offsets = [0, 6], sizes = [1, 1], strides = [1, 1]} : vector<1x7xf32> to vector<1x1xf32>
    %244 = vector.broadcast %243 : vector<1x1xf32> to vector<1x128xf32>
    %245 = arith.mulf %242, %244 : vector<1x128xf32>
    %246 = arith.addf %232, %245 : vector<1x128xf32>
    %c0_55 = arith.constant 0 : index
    %c0_56 = arith.constant 0 : index
    %247 = vector.load %arg12[%c0_55, %c0_56] : memref<1x128xf32, #tpu.memory_space<vmem>>, vector<1x128xf32>
    tpu.vector_store %arg12[%c0_55, %c0_56], %246 {strides = array<i32>} : memref<1x128xf32, #tpu.memory_space<vmem>>, vector<1x128xf32>,
    return
  }
  func.func @transform_0(%arg0: i32) -> (i32, i32) {
    %c0_i32 = arith.constant 0 : i32
    %c0_i32_0 = arith.constant 0 : i32
    return %c0_i32, %arg0 : i32, i32
  }
  func.func @transform_1(%arg0: i32) -> (i32, i32) {
    %c0_i32 = arith.constant 0 : i32
    %c0_i32_0 = arith.constant 0 : i32
    %c0_i32_1 = arith.constant 0 : i32
    return %c0_i32, %c0_i32_0 : i32, i32
  }
  func.func @transform_2(%arg0: i32) -> (i32, i32) {
    %c0_i32 = arith.constant 0 : i32
    %c0_i32_0 = arith.constant 0 : i32
    %c0_i32_1 = arith.constant 0 : i32
    return %c0_i32, %c0_i32_0 : i32, i32
  }
  func.func @transform_3(%arg0: i32) -> (i32, i32) {
    %c0_i32 = arith.constant 0 : i32
    %c0_i32_0 = arith.constant 0 : i32
    %c0_i32_1 = arith.constant 0 : i32
    return %c0_i32, %c0_i32_0 : i32, i32
  }
  func.func @transform_4(%arg0: i32) -> (i32, i32) {
    %c0_i32 = arith.constant 0 : i32
    %c0_i32_0 = arith.constant 0 : i32
    %c0_i32_1 = arith.constant 0 : i32
    return %c0_i32, %c0_i32_0 : i32, i32
  }
  func.func @transform_5(%arg0: i32) -> (i32, i32) {
    %c0_i32 = arith.constant 0 : i32
    %c0_i32_0 = arith.constant 0 : i32
    %c0_i32_1 = arith.constant 0 : i32
    return %c0_i32, %c0_i32_0 : i32, i32
  }
  func.func @transform_6(%arg0: i32) -> (i32, i32) {
    %c0_i32 = arith.constant 0 : i32
    %c0_i32_0 = arith.constant 0 : i32
    %c0_i32_1 = arith.constant 0 : i32
    return %c0_i32, %c0_i32_0 : i32, i32
  }
  func.func @transform_7(%arg0: i32) -> (i32, i32) {
    %c0_i32 = arith.constant 0 : i32
    %c0_i32_0 = arith.constant 0 : i32
    %c0_i32_1 = arith.constant 0 : i32
    return %c0_i32, %c0_i32_0 : i32, i32
  }
  func.func @transform_8(%arg0: i32) -> (i32, i32) {
    %c0_i32 = arith.constant 0 : i32
    %c0_i32_0 = arith.constant 0 : i32
    %c0_i32_1 = arith.constant 0 : i32
    return %c0_i32, %c0_i32_0 : i32, i32
  }
  func.func @transform_9(%arg0: i32) -> (i32, i32) {
    %c0_i32 = arith.constant 0 : i32
    %c0_i32_0 = arith.constant 0 : i32
    %c0_i32_1 = arith.constant 0 : i32
    return %c0_i32, %c0_i32_0 : i32, i32
  }
  func.func @transform_10(%arg0: i32) -> (i32, i32) {
    %c0_i32 = arith.constant 0 : i32
    %c0_i32_0 = arith.constant 0 : i32
    %c0_i32_1 = arith.constant 0 : i32
    return %c0_i32, %c0_i32_0 : i32, i32
  }
  func.func @transform_11(%arg0: i32) -> (i32, i32) {
    %c0_i32 = arith.constant 0 : i32
    %c0_i32_0 = arith.constant 0 : i32
    return %c0_i32, %arg0 : i32, i32
  }
}

</mosaic_0001>

<bundles_post_ra>
// kernel: tpu_custom_call.1
= control target key start
LH: loop header
LB: loop body
LE: loop exit
PB: predicated region body
PF: predicated region fallthrough
CT: control target
= control target key end

     0   :  { %s753_s0 = inlined_call_operand.vmem [shape: f32[4,128], index: 0, kind: input, shape index: {}]   ;;  %s754_s1 = inlined_call_operand.vmem [shape: f32[4,9], index: 1, kind: input, shape index: {}]   ;;  %s755_s2 = inlined_call_operand.vmem [shape: f32[4,9], index: 2, kind: input, shape index: {}]   ;;  %s756_s3 = inlined_call_operand.vmem [shape: f32[4,9], index: 3, kind: input, shape index: {}]   ;;  %s757_s4 = inlined_call_operand.vmem [shape: f32[4,1], index: 4, kind: input, shape index: {}]   ;;  %s758_s5 = inlined_call_operand.vmem [shape: f32[4,1], index: 5, kind: input, shape index: {}]   ;;  %s759_s6 = inlined_call_operand.<no memory space> [shape: f32[1,1], index: 6, kind: input, shape index: {}]   ;;  %s760_s7 = inlined_call_operand.vmem [shape: f32[1,7], index: 7, kind: input, shape index: {}]   ;;  %s761_s8 = inlined_call_operand.vmem [shape: f32[1,7], index: 8, kind: input, shape index: {}]   ;;  %s762_s9 = inlined_call_operand.vmem [shape: f32[1,7], index: 9, kind: input, shape index: {}]   ;;  %s763_s11 = inlined_call_operand.hbm [shape: f32[1,128], index: 11, kind: output, shape index: {}]   ;;  %s764_s10 = inlined_call_operand.<no memory space> [shape: f32[1,1], index: 10, kind: input, shape index: {}]  }
   0x1   :  { %v16_v0 = vstv %s759_s6  ;;  %v18_v1 = vstv %s764_s10 }
   0x2   :  { %17 = vst [vmem:[#allocation2] sm:$0x1] %v16_v0  ;;  %19 = vst [vmem:[#allocation3] sm:$0x1] %v18_v1 }
   0x3   :  { %v47_v2 = vld [vmem:[%s757_s4] sm:$0xf]  ;;  %v559_v4 = vmov 0  }
   0x4   :  { %v45_v3 = vld [vmem:[%s755_s2] sm:$0xf]  ;;  %498 = vset.pattern.permute.xlu1 %v559_v4  ;;  %497 = vset.pattern.permute.xlu0 %v559_v4 }
   0x5   :  { %50 = vperm.xlu0 %497, %v47_v2   ;;  %62 = vperm.xlu1 %498, %v45_v3   ;;  %v646_v5 = vld [vmem:[%s756_s3] sm:$0xf] }
   0x6   :  { %v44_v6 = vld [vmem:[%s754_s1] sm:$0xf] }
   0x7   :  { %20 = vsyncpa [#allocation5], 0  ;;  %v560_v7 = vmov 1   ;;  %v561_v8 = vmov 2   ;;  %v562_v9 = vmov 3   ;;  %v563_v10 = vmov 4  }
   0x8   :  { %v564_v11 = vmov 5   ;;  %v565_v12 = vmov 6   ;;  %v566_v13 = vmov 7   ;;  %v567_v14 = vmov 8   ;;  %v219_v15 = vld [vmem:[%s758_s5] sm:$0xf] }
   0x9   :  { %70 = vperm.xlu1 %498, %v646_v5   ;;  %56 = vperm.xlu0 %497, %v44_v6   ;;  %v246_v16 = vld [vmem:[%s761_s8] sm:$0x1]  ;;  %v248_v20 = vld [vmem:[#allocation3] sm:$0x1]  ;;  %vm226_vm0 = vcmask 1043456  }
   0xa   :  { %v245_v17 = vld [vmem:[%s760_s7] sm:$0x1] }
   0xb   :  { %v247_v18 = vld [vmem:[%s762_s9] sm:$0x1] }
   0xc   :  { %v234_v19 = vld [vmem:[#allocation2] sm:$0x1] }
   0xd   :  { %500 = vset.pattern.permute.xlu1 %v560_v7  ;;  %499 = vset.pattern.permute.xlu0 %v560_v7  ;;  %v702_v23 = vld [vmem:[%s753_s0] sm:$0xf]  ;;  %s568_s0 = smov [#allocation4]  }
   0xe   :  { %81 = vperm.xlu1 %500, %v45_v3   ;;  %76 = vperm.xlu0 %499, %v44_v6   ;;  %s479_s29 = sshll.u32 %s568_s0, 4  ;;  %s480_s29 = int_to_ptr.vmem [resolvable:$true] %s479_s29 }
   0xf   :  { %s535_s30 = scalar_lea.vmem %s480_s29, 16  ;;  %s539_s12 = scalar_lea.vmem %s480_s29, 32 }
  0x10   :  { %p536_p0 = scmp.ne.s32.totalorder %s480_s29, %s535_s30  ;;  %p540_p1 = scmp.lt.s32.totalorder %s480_s29, %s480_s29 }
  0x11   :  { %p541_p2 = scmp.lt.s32.totalorder %s539_s12, %s535_s30 }
  0x12   :  { %88 = vperm.xlu1 %500, %v646_v5   ;;  %501 = vset.pattern.permute.xlu0 %v561_v8 }
  0x13   :  { %94 = vperm.xlu0 %501, %v44_v6   ;;  %p542_p3 = por %p541_p2, %p540_p1 }
  0x15   :  { %p543_p4 = pnand %p542_p3, %p536_p0 }
  0x16   :  { %502 = vset.pattern.permute.xlu1 %v561_v8 }
  0x17   :  { %99 = vperm.xlu1 %502, %v45_v3   ;;  %503 = vset.pattern.permute.xlu0 %v562_v9 }
  0x18   :  { %112 = vperm.xlu0 %503, %v44_v6  }
  0x1b   :  { %106 = vperm.xlu1 %502, %v646_v5  }
  0x1c   :  { %505 = vset.pattern.permute.xlu0 %v563_v10 }
  0x1d   :  { %130 = vperm.xlu0 %505, %v44_v6  }
  0x1f   :  { %504 = vset.pattern.permute.xlu1 %v562_v9 }
  0x20   :  { %117 = vperm.xlu1 %504, %v45_v3  }
  0x21   :  { %507 = vset.pattern.permute.xlu0 %v564_v11 }
  0x22   :  { %148 = vperm.xlu0 %507, %v44_v6  }
  0x24   :  { %124 = vperm.xlu1 %504, %v646_v5  }
  0x26   :  { %509 = vset.pattern.permute.xlu0 %v565_v12 }
  0x27   :  { %166 = vperm.xlu0 %509, %v44_v6  }
  0x28   :  { %506 = vset.pattern.permute.xlu1 %v563_v10 }
  0x29   :  { %135 = vperm.xlu1 %506, %v45_v3  }
  0x2b   :  { %511 = vset.pattern.permute.xlu0 %v566_v13 }
  0x2c   :  { %184 = vperm.xlu0 %511, %v44_v6  }
  0x2d   :  { %142 = vperm.xlu1 %506, %v646_v5  }
  0x30   :  { %514 = vset.pattern.permute.xlu0 %v567_v14 }
  0x31   :  { %508 = vset.pattern.permute.xlu1 %v564_v11  ;;  %207 = vperm.xlu0 %514, %v45_v3  }
  0x32   :  { %153 = vperm.xlu1 %508, %v45_v3  }
  0x35   :  { %517 = vset.pattern.permute.xlu0 %v559_v4 }
  0x36   :  { %160 = vperm.xlu1 %508, %v646_v5   ;;  %222 = vperm.xlu0 %517, %v219_v15  }
  0x3a   :  { %510 = vset.pattern.permute.xlu1 %v565_v12  ;;  %271 = vperm.xlu0 %517, %v246_v16  }
  0x3b   :  { %171 = vperm.xlu1 %510, %v45_v3  }
  0x3e   :  { %520 = vset.pattern.permute.xlu0 %v560_v7 }
  0x3f   :  { %178 = vperm.xlu1 %510, %v646_v5   ;;  %302 = vperm.xlu0 %520, %v246_v16  }
  0x43   :  { %512 = vset.pattern.permute.xlu1 %v566_v13  ;;  %524 = vset.pattern.permute.xlu0 %v563_v10 }
  0x44   :  { %189 = vperm.xlu1 %512, %v45_v3   ;;  %383 = vperm.xlu0 %524, %v245_v17  }
  0x48   :  { %513 = vset.pattern.permute.xlu1 %v567_v14  ;;  %392 = vperm.xlu0 %524, %v246_v16  }
  0x49   :  { %202 = vperm.xlu1 %513, %v44_v6  }
  0x4c   :  { %528 = vset.pattern.permute.xlu0 %v561_v8 }
  0x4d   :  { %515 = vset.pattern.permute.xlu1 %v566_v13  ;;  %343 = vperm.xlu0 %528, %v247_v18  }
  0x4e   :  { %196 = vperm.xlu1 %515, %v646_v5  }
  0x51   :  { %529 = vset.pattern.permute.xlu0 %v562_v9 }
  0x52   :  { %516 = vset.pattern.permute.xlu1 %v567_v14  ;;  %353 = vperm.xlu0 %529, %v245_v17  }
  0x53   :  { %214 = vperm.xlu1 %516, %v646_v5  }
  0x56   :  { %373 = vperm.xlu0 %529, %v247_v18  }
  0x57   :  { %518 = vset.pattern.permute.xlu1 %v559_v4 }
  0x58   :  { %237 = vperm.xlu1 %518, %v234_v19  }
  0x5a   :  { %532 = vset.pattern.permute.xlu0 %v564_v11 }
  0x5b   :  { %433 = vperm.xlu0 %532, %v247_v18  }
  0x5c   :  { %261 = vperm.xlu1 %518, %v245_v17  }
  0x5f   :  { %534 = vset.pattern.permute.xlu0 %v565_v12 }
  0x60   :  { %519 = vset.pattern.permute.xlu1 %v560_v7 }
  0x61   :  { %293 = vperm.xlu1 %519, %v245_v17  }
  0x65   :  { %521 = vset.pattern.permute.xlu1 %v561_v8 }
  0x66   :  { %323 = vperm.xlu1 %521, %v245_v17  }
  0x6a   :  { %332 = vperm.xlu1 %521, %v246_v16  }
  0x6e   :  { %522 = vset.pattern.permute.xlu1 %v559_v4 }
  0x6f   :  { %283 = vperm.xlu1 %522, %v247_v18  }
  0x73   :  { %523 = vset.pattern.permute.xlu1 %v562_v9 }
  0x74   :  { %362 = vperm.xlu1 %523, %v246_v16  }
  0x78   :  { %525 = vset.pattern.permute.xlu1 %v559_v4 }
  0x79   :  { %251 = vperm.xlu1 %525, %v248_v20  }
  0x7d   :  { %526 = vset.pattern.permute.xlu1 %v560_v7 }
  0x7e   :  { %313 = vperm.xlu1 %526, %v247_v18  }
  0x82   :  { %527 = vset.pattern.permute.xlu1 %v564_v11 }
  0x83   :  { %413 = vperm.xlu1 %527, %v245_v17  }
  0x84   :  { %v51_v21 = vpop.permute.xlu0 %50  ;;  %v63_v22 = vpop.permute.xlu1 %62 }
  0x87   :  { %422 = vperm.xlu1 %527, %v246_v16  }
  0x88   :  { %v71_v24 = vpop.permute.xlu1 %70  ;;  %v57_v25 = vpop.permute.xlu0 %56 }
  0x89   :  { %v59_v26 = vsub.f32 %v702_v23, %v57_v25 }
  0x8b   :  { %v65_v27 = vmul.f32 %v63_v22, %v59_v26  ;;  %530 = vset.pattern.permute.xlu1 %v565_v12 }
  0x8c   :  { %443 = vperm.xlu1 %530, %v245_v17  }
  0x8d   :  { %v66_v28 = vmax.f32 %v65_v27, 0.0  ;;  %v82_v29 = vpop.permute.xlu1 %81  ;;  %v77_v37 = vpop.permute.xlu0 %76 }
  0x8e   :  { %v79_v43 = vsub.f32 %v702_v23, %v77_v37 }
  0x8f   :  { %v67_v30 = vmin.f32 %v66_v28, 1.0 }
  0x90   :  { %452 = vperm.xlu1 %530, %v246_v16   ;;  %v84_v47 = vmul.f32 %v82_v29, %v79_v43 }
  0x91   :  { %v73_v31 = vmul.f32 %v71_v24, %v67_v30  ;;  %v89_v32 = vpop.permute.xlu1 %88 }
  0x92   :  { %v95_v39 = vpop.permute.xlu0 %94  ;;  %v85_v52 = vmax.f32 %v84_v47, 0.0 }
  0x93   :  { %v97_v45 = vsub.f32 %v702_v23, %v95_v39  ;;  %v74_v9 = vadd.f32 %v73_v31, %v51_v21 }
  0x94   :  { %531 = vset.pattern.permute.xlu1 %v563_v10  ;;  %v86_v60 = vmin.f32 %v85_v52, 1.0  ;;  %v240_v52 = vlaneseq }
  0x95   :  { %403 = vperm.xlu1 %531, %v247_v18  }
  0x96   :  { %v100_v33 = vpop.permute.xlu1 %99  ;;  %v91_v5 = vmul.f32 %v89_v32, %v86_v60 }
  0x97   :  { %v113_v41 = vpop.permute.xlu0 %112  ;;  %v102_v50 = vmul.f32 %v100_v33, %v97_v45 }
  0x98   :  { %v115_v49 = vsub.f32 %v702_v23, %v113_v41  ;;  %v92_v14 = vadd.f32 %v91_v5, %v74_v9 }
  0x99   :  { %533 = vset.pattern.permute.xlu1 %v565_v12  ;;  %v103_v57 = vmax.f32 %v102_v50, 0.0 }
  0x9a   :  { %v107_v34 = vpop.permute.xlu1 %106  ;;  %463 = vperm.xlu1 %533, %v247_v18  }
  0x9b   :  { %v104_v1 = vmin.f32 %v103_v57, 1.0 }
  0x9c   :  { %v131_v44 = vpop.permute.xlu0 %130 }
  0x9d   :  { %v133_v51 = vsub.f32 %v702_v23, %v131_v44  ;;  %v109_v10 = vmul.f32 %v107_v34, %v104_v1 }
  0x9f   :  { %v118_v35 = vpop.permute.xlu1 %117  ;;  %v110_v17 = vadd.f32 %v109_v10, %v92_v14 }
  0xa0   :  { %v120_v55 = vmul.f32 %v118_v35, %v115_v49 }
  0xa1   :  { %v149_v48 = vpop.permute.xlu0 %148 }
  0xa2   :  { %v151_v56 = vsub.f32 %v702_v23, %v149_v48  ;;  %v121_v63 = vmax.f32 %v120_v55, 0.0  ;;  %v241_v55 = vshrl.u32 %v240_v52, 7 }
  0xa3   :  { %v125_v36 = vpop.permute.xlu1 %124 }
  0xa4   :  { %v122_v6 = vmin.f32 %v121_v63, 1.0 }
  0xa6   :  { %v167_v53 = vpop.permute.xlu0 %166  ;;  %v127_v15 = vmul.f32 %v125_v36, %v122_v6 }
  0xa7   :  { %v169_v59 = vsub.f32 %v702_v23, %v167_v53 }
  0xa8   :  { %v136_v38 = vpop.permute.xlu1 %135  ;;  %v128_v26 = vadd.f32 %v127_v15, %v110_v17 }
  0xa9   :  { %v138_v58 = vmul.f32 %v136_v38, %v133_v51 }
  0xab   :  { %v185_v62 = vpop.permute.xlu0 %184  ;;  %v139_v2 = vmax.f32 %v138_v58, 0.0 }
  0xac   :  { %v143_v40 = vpop.permute.xlu1 %142  ;;  %v187_v4 = vsub.f32 %v702_v23, %v185_v62 }
  0xad   :  { %v140_v11 = vmin.f32 %v139_v2, 1.0 }
  0xaf   :  { %v145_v20 = vmul.f32 %v143_v40, %v140_v11 }
  0xb0   :  { %v208_v19 = vpop.permute.xlu0 %207 }
  0xb1   :  { %v154_v42 = vpop.permute.xlu1 %153  ;;  %v146_v29 = vadd.f32 %v145_v20, %v128_v26 }
  0xb2   :  { %v156_v0 = vmul.f32 %v154_v42, %v151_v56 }
  0xb4   :  { %v157_v7 = vmax.f32 %v156_v0, 0.0 }
  0xb5   :  { %v161_v46 = vpop.permute.xlu1 %160  ;;  %v223_v41 = vpop.permute.xlu0 %222 }
  0xb6   :  { %v158_v16 = vmin.f32 %v157_v7, 1.0 }
  0xb8   :  { %v163_v27 = vmul.f32 %v161_v46, %v158_v16 }
  0xb9   :  { %v272_v47 = vpop.permute.xlu0 %271 }
  0xba   :  { %v172_v54 = vpop.permute.xlu1 %171  ;;  %v164_v33 = vadd.f32 %v163_v27, %v146_v29 }
  0xbb   :  { %v174_v3 = vmul.f32 %v172_v54, %v169_v59  ;;  %v716_v59 = vsub.s32 0, %v241_v55 }
  0xbd   :  { %v175_v12 = vmax.f32 %v174_v3, 0.0 }
  0xbe   :  { %v179_v61 = vpop.permute.xlu1 %178  ;;  %v303_v50 = vpop.permute.xlu0 %302 }
  0xbf   :  { %v176_v22 = vmin.f32 %v175_v12, 1.0  ;;  %v308_v7 = vrot.slane %v303_v50, %v716_v59 }
  0xc1   :  { %v181_v21 = vmul.f32 %v179_v61, %v176_v22 }
  0xc3   :  { %v190_v8 = vpop.permute.xlu1 %189  ;;  %v182_v35 = vadd.f32 %v181_v21, %v164_v33  ;;  %v384_v56 = vpop.permute.xlu0 %383 }
  0xc4   :  { %v192_v13 = vmul.f32 %v190_v8, %v187_v4  ;;  %v277_v4 = vrot.slane %v272_v47, %v716_v59 }
  0xc6   :  { %v193_v24 = vmax.f32 %v192_v13, 0.0 }
  0xc7   :  { %v393_v61 = vpop.permute.xlu0 %392 }
  0xc8   :  { %v203_v18 = vpop.permute.xlu1 %202  ;;  %v194_v30 = vmin.f32 %v193_v24, 1.0 }
  0xc9   :  { %v205_v25 = vsub.f32 %v702_v23, %v203_v18 }
  0xcb   :  { %v210_v28 = vmul.f32 %v208_v19, %v205_v25  ;;  %v389_v19 = vrot.slane %v384_v56, %v716_v59 }
  0xcc   :  { %v344_v3 = vpop.permute.xlu0 %343 }
  0xcd   :  { %v211_v31 = vmax.f32 %v210_v28, 0.0  ;;  %v197_v32 = vpop.permute.xlu1 %196 }
  0xce   :  { %v199_v34 = vmul.f32 %v197_v32, %v194_v30 }
  0xcf   :  { %v212_v36 = vmin.f32 %v211_v31, 1.0  ;;  %v398_v31 = vrot.slane %v393_v61, %v716_v59 }
  0xd0   :  { %v200_v38 = vadd.f32 %v199_v34, %v182_v35 }
  0xd1   :  { %v354_v12 = vpop.permute.xlu0 %353 }
  0xd2   :  { %v215_v37 = vpop.permute.xlu1 %214  ;;  %v359_v16 = vrot.slane %v354_v12, %v716_v59 }
  0xd3   :  { %v217_v39 = vmul.f32 %v215_v37, %v212_v36 }
  0xd5   :  { %v218_v40 = vadd.f32 %v217_v39, %v200_v38 }
  0xd7   :  { %v238_v42 = vpop.permute.xlu1 %237  ;;  %v225_v43 = vmul.f32 %v223_v41, %v218_v40 }
  0xd8   :  { %v243_v63 = vrot.slane %v238_v42, %v716_v59  ;;  %v349_v42 = vrot.slane %v344_v3, %v716_v59 }
  0xd9   :  { %v227_v44 = vsel %vm226_vm0, %v225_v43, 0.0 }
  0xda   :  { %v228_v45 = vrot.slane %v227_v44, 4 }
  0xdb   :  { %v262_v23 = vpop.permute.xlu1 %261 }
  0xdc   :  { %v229_v48 = vadd.f32 %v228_v45, %v227_v44  ;;  %v267_v2 = vrot.slane %v262_v23, %v716_v59 }
  0xde   :  { %v230_v51 = vrot.slane %v229_v48, 2 }
  0xe0   :  { %v294_v46 = vpop.permute.xlu1 %293  ;;  %v231_v54 = vadd.f32 %v230_v51, %v229_v48 }
  0xe1   :  { %v299_v6 = vrot.slane %v294_v46, %v716_v59  ;;  %v374_v46 = vpop.permute.xlu0 %373 }
  0xe2   :  { %v232_v58 = vrot.slane %v231_v54, 1  ;;  %v379_v50 = vrot.slane %v374_v46, %v716_v59 }
  0xe4   :  { %v233_v60 = vadd.f32 %v232_v58, %v231_v54 }
  0xe5   :  { %v324_v49 = vpop.permute.xlu1 %323 }
  0xe6   :  { %v244_v0 = vadd.f32 %v243_v63, %v233_v60  ;;  %v329_v10 = vrot.slane %v324_v49, %v716_v59 }
  0xe8   :  { %v268_v5 = vsub.f32 %v244_v0, %v267_v2  ;;  %v300_v8 = vsub.f32 %v244_v0, %v299_v6  ;;  %v330_v15 = vsub.f32 %v244_v0, %v329_v10  ;;  %v360_v25 = vsub.f32 %v244_v0, %v359_v16 }
  0xe9   :  { %v333_v53 = vpop.permute.xlu1 %332  ;;  %v390_v30 = vsub.f32 %v244_v0, %v389_v19 }
  0xea   :  { %v278_v11 = vmul.f32 %v277_v4, %v268_v5  ;;  %v338_v13 = vrot.slane %v333_v53, %v716_v59  ;;  %v309_v14 = vmul.f32 %v308_v7, %v300_v8 }
  0xeb   :  { %v399_v41 = vmul.f32 %v398_v31, %v390_v30 }
  0xec   :  { %v279_v18 = vmax.f32 %v278_v11, 0.0  ;;  %v339_v20 = vmul.f32 %v338_v13, %v330_v15  ;;  %v310_v24 = vmax.f32 %v309_v14, 0.0 }
  0xed   :  { %v400_v53 = vmax.f32 %v399_v41, 0.0 }
  0xee   :  { %v284_v57 = vpop.permute.xlu1 %283  ;;  %v280_v27 = vmin.f32 %v279_v18, 1.0  ;;  %v340_v32 = vmax.f32 %v339_v20, 0.0  ;;  %v311_v35 = vmin.f32 %v310_v24, 1.0 }
  0xef   :  { %v289_v28 = vrot.slane %v284_v57, %v716_v59  ;;  %v434_v57 = vpop.permute.xlu0 %433  ;;  %v401_v63 = vmin.f32 %v400_v53, 1.0 }
  0xf0   :  { %v341_v23 = vmin.f32 %v340_v32, 1.0  ;;  %v439_v61 = vrot.slane %v434_v57, %v716_v59 }
  0xf1   :  { %v290_v37 = vmul.f32 %v289_v28, %v280_v27 }
  0xf2   :  { %v350_v54 = vmul.f32 %v349_v42, %v341_v23 }
  0xf3   :  { %v363_v62 = vpop.permute.xlu1 %362 }
  0xf4   :  { %v368_v22 = vrot.slane %v363_v62, %v716_v59 }
  0xf6   :  { %v369_v33 = vmul.f32 %v368_v22, %v360_v25 }
  0xf8   :  { %v252_v1 = vpop.permute.xlu1 %251  ;;  %v370_v44 = vmax.f32 %v369_v33, 0.0 }
  0xf9   :  { %v257_v34 = vrot.slane %v252_v1, %v716_v59 }
  0xfa   :  { %v371_v55 = vmin.f32 %v370_v44, 1.0 }
  0xfb   :  { %v291_v45 = vadd.f32 %v290_v37, %v257_v34 }
  0xfc   :  { %v380_v1 = vmul.f32 %v379_v50, %v371_v55 }
  0xfd   :  { %v314_v9 = vpop.permute.xlu1 %313 }
  0xfe   :  { %v319_v29 = vrot.slane %v314_v9, %v716_v59 }
 0x100   :  { %v320_v38 = vmul.f32 %v319_v29, %v311_v35 }
 0x102   :  { %v414_v17 = vpop.permute.xlu1 %413  ;;  %v321_v48 = vadd.f32 %v320_v38, %v291_v45 }
 0x103   :  { %v419_v21 = vrot.slane %v414_v17, %v716_v59 }
 0x104   :  { %v351_v60 = vadd.f32 %v350_v54, %v321_v48 }
 0x105   :  { %v420_v39 = vsub.f32 %v244_v0, %v419_v21 }
 0x106   :  { %v423_v26 = vpop.permute.xlu1 %422  ;;  %v381_v5 = vadd.f32 %v380_v1, %v351_v60 }
 0x107   :  { %v428_v36 = vrot.slane %v423_v26, %v716_v59 }
 0x109   :  { %v429_v47 = vmul.f32 %v428_v36, %v420_v39 }
 0x10b   :  { %v444_v40 = vpop.permute.xlu1 %443  ;;  %v430_v56 = vmax.f32 %v429_v47, 0.0 }
 0x10c   :  { %v449_v43 = vrot.slane %v444_v40, %v716_v59 }
 0x10d   :  { %v431_v2 = vmin.f32 %v430_v56, 1.0 }
 0x10e   :  { %v450_v51 = vsub.f32 %v244_v0, %v449_v43 }
 0x10f   :  { %v453_v49 = vpop.permute.xlu1 %452  ;;  %v440_v6 = vmul.f32 %v439_v61, %v431_v2 }
 0x110   :  { %v458_v52 = vrot.slane %v453_v49, %v716_v59 }
 0x112   :  { %v459_v58 = vmul.f32 %v458_v52, %v450_v51 }
 0x114   :  { %v404_v62 = vpop.permute.xlu1 %403  ;;  %v460_v4 = vmax.f32 %v459_v58, 0.0 }
 0x115   :  { %v409_v3 = vrot.slane %v404_v62, %v716_v59 }
 0x116   :  { %v461_v9 = vmin.f32 %v460_v4, 1.0 }
 0x117   :  { %v410_v0 = vmul.f32 %v409_v3, %v401_v63 }
 0x119   :  { %v411_v7 = vadd.f32 %v410_v0, %v381_v5  ;;  %v464_v8 = vpop.permute.xlu1 %463 }
 0x11a   :  { %v469_v10 = vrot.slane %v464_v8, %v716_v59 }
 0x11b   :  { %v441_v11 = vadd.f32 %v440_v6, %v411_v7 }
 0x11c   :  { %v470_v12 = vmul.f32 %v469_v10, %v461_v9 }
 0x11e   :  { %v471_v13 = vadd.f32 %v470_v12, %v441_v11 }
 0x120   :  { %472 = vst [vmem:[#allocation4] sm:$0x1] %v471_v13 }
 0x121   :  { %546 = shalt.err (!%p543_p4)
}
 0x122   :  { %s547_s15 = scalar_lea.hbm %s763_s11, 16 }
 0x123   :  { %p548_p5 = scmp.ne.s32.totalorder %s763_s11, %s547_s15  ;;  %p551_p6 = scmp.lt.u32.totalorder %s547_s15, %s763_s11 }
 0x125   :  { %p553_p7 = pnand %p551_p6, %p548_p5 }
 0x127   :  { %556 = shalt.err (!%p553_p7)
}
 0x128   :  { %482 = dma.vmem_to_hbm [thread:$0]  %s480_s29, 16, %s763_s11, [#allocation5]  }
 0x129   :  { %557 = dma.done.wait [#allocation5], 16  }
 0x12a   :  { %558 = vsyncadd [#allocation5], 4294967280 }
 0x12b   :  { %486 = vsyncpa [#allocation5], 1 }

</bundles_post_ra>
